<compile_context>
chip_gen: v5e
topology: v5e:2x2
jax: 0.10.0
libtpu: 0.0.40
codegen_flags: <defaults>
</compile_context>

<pallas_src>
import jax
import jax.numpy as jnp
from jax.experimental import pallas as pl
from jax.experimental.pallas import tpu as pltpu


def _psa_kernel(x_ref, wqr_ref, wch_ref, wsp_ref, o_ref):
    # x: (C, HW) for the current batch element — channels on sublanes,
    # flattened spatial on lanes (native NCHW layout, no host transpose).
    x = x_ref[0].astype(jnp.float32)
    hw = x.shape[1]

    # ---------------- spatial_pool -> per-channel gate -----------------------
    # conv_q_right (C -> 1):  q_r[hw] = sum_c Wqr[c] * x[c, hw]
    q_r = jnp.sum(x * wqr_ref[...], axis=0, keepdims=True)               # (1, HW)
    q_r = q_r - jnp.max(q_r, axis=1, keepdims=True)
    e_r = jnp.exp(q_r)
    sm_r = e_r * pl.reciprocal(jnp.sum(e_r, axis=1, keepdims=True))      # (1, HW)
    # Linearity: (Wvr x) @ sm^T == Wvr @ (x @ sm^T)  ->  reduce x first.
    wctx = jnp.sum(x * sm_r, axis=1, keepdims=True)                      # (C, 1)
    # Folded weights: W_ch = W_up @ W_v_right  ->  one tiny dot gives the gate.
    ch = jnp.dot(wch_ref[...], wctx, preferred_element_type=jnp.float32)  # (C, 1)
    mask_ch = jax.nn.sigmoid(ch)                                          # (C, 1)

    # ---------------- channel_pool -> per-pixel gate --------------------------
    # Linearity: mean_hw(Wql x) == Wql @ mean_hw(x);
    #            avg^T (Wvl x) == ((Wvl^T Wql) mean_hw(x))^T x.
    colmean = jnp.sum(x, axis=1, keepdims=True) * (1.0 / hw)              # (C, 1)
    w_ctx = jnp.dot(wsp_ref[...], colmean, preferred_element_type=jnp.float32)  # (C, 1)
    ctx = jnp.sum(x * w_ctx, axis=0, keepdims=True)                       # (1, HW)
    ctx = ctx - jnp.max(ctx, axis=1, keepdims=True)
    e_l = jnp.exp(ctx)
    sm_l = e_l * pl.reciprocal(jnp.sum(e_l, axis=1, keepdims=True))       # (1, HW)
    mask_sp = jax.nn.sigmoid(sm_l)                                        # (1, HW)

    # ---------------- fused gating: x*mask_sp + x*mask_ch = x*(sum) ----------
    o_ref[0] = (x * (mask_ch + mask_sp)).astype(o_ref.dtype)


def psa_p_forward(x_nchw, params, *, io_dtype=None,
                  vmem_limit_bytes=48 * 1024 * 1024):
    """PSA_p forward.  x_nchw: (B, C, H, W). Weights in PyTorch (out,in) layout."""
    B, C, H, W = x_nchw.shape
    HW = H * W

    # NCHW -> (B, C, HW): a pure reshape, no HBM transpose round trip.
    x_flat = x_nchw.reshape(B, C, HW)
    if io_dtype is not None:
        x_flat = x_flat.astype(io_dtype)
    out_dtype = x_flat.dtype

    # Kernel-side weight layouts (tiny, exact host-side folding of the 1x1 convs).
    wqr_col = params["wq_right"].reshape(C, 1)                           # (C, 1)
    w_ch = jnp.dot(params["w_up"], params["wv_right"])                   # (C, C)
    w_sp = jnp.dot(params["wv_left"].T, params["wq_left"])               # (C, C)

    full = lambda a: pl.BlockSpec(a.shape, lambda b: (0, 0))

    out_flat = pl.pallas_call(
        _psa_kernel,
        out_shape=jax.ShapeDtypeStruct((B, C, HW), out_dtype),
        grid_spec=pltpu.PrefetchScalarGridSpec(
            num_scalar_prefetch=0,
            grid=(B,),
            in_specs=[
                pl.BlockSpec((1, C, HW), lambda b: (b, 0, 0)),   # x, one batch per step
                full(wqr_col),   # conv_q_right weight as (C, 1) column
                full(w_ch),      # folded W_up @ W_v_right  (C, C)
                full(w_sp),      # folded W_v_left^T @ W_q_left (C, C)
            ],
            out_specs=pl.BlockSpec((1, C, HW), lambda b: (b, 0, 0)),
        ),
        compiler_params=pltpu.CompilerParams(
            dimension_semantics=("parallel",),
            vmem_limit_bytes=vmem_limit_bytes,
        ),
    )(x_flat, wqr_col, w_ch, w_sp)

    # TODO(synk): for very large C*HW per batch element (>~2M f32 elements) add
    # an HW-tile grid axis with a stats-pass + apply-pass structure so blocks
    # fit v7x's 64 MiB VMEM; at typical/demo sizes the monolithic per-batch
    # block is the minimum-HBM-traffic choice.
    return out_flat.reshape(B, C, H, W)


def init_params(key, inplanes, planes):
    """Deterministic synthetic init (kaiming-normal-like, fan_in), PyTorch layout."""
    inter = planes // 2
    k1, k2, k3, k4, k5 = jax.random.split(key, 5)

    def kaiming(k, fan_in, shape):
        std = (2.0 / fan_in) ** 0.5
        return std * jax.random.normal(k, shape, dtype=jnp.float32)

    # (out_channels, in_channels) for the 1x1 convs.
    return {
        "wq_right": kaiming(k1, inplanes, (1, inplanes)),
        "wv_right": kaiming(k2, inplanes, (inter, inplanes)),
        "w_up":     kaiming(k3, inter,    (planes, inter)),
        "wq_left":  kaiming(k4, inplanes, (inter, inplanes)),
        "wv_left":  kaiming(k5, inplanes, (inter, inplanes)),
    }


def _psa_reference(x, p):
    """Pure-JAX reference mirroring the PyTorch graph exactly (sanity check)."""
    B, C, H, W = x.shape
    HW = H * W
    xf = x.reshape(B, C, HW)
    # spatial_pool
    input_x = jnp.einsum("oc,bch->boh", p["wv_right"], xf)                 # (B,Ci,HW)
    cmask = jax.nn.softmax(jnp.einsum("oc,bch->boh", p["wq_right"], xf), axis=2)
    context = jnp.einsum("boh,bkh->bok", input_x, cmask)[..., 0]           # (B, Ci)
    mask_ch = jax.nn.sigmoid(jnp.einsum("oc,bc->bo", p["w_up"], context))
    out_ch = x * mask_ch[:, :, None, None]
    # channel_pool
    g = jnp.einsum("oc,bch->boh", p["wq_left"], xf)
    avg = jnp.mean(g, axis=2)                                              # (B, Ci)
    theta = jnp.einsum("oc,bch->boh", p["wv_left"], xf)
    ctx = jnp.einsum("bo,boh->bh", avg, theta)                             # (B, HW)
    mask_sp = jax.nn.sigmoid(jax.nn.softmax(ctx, axis=1)).reshape(B, 1, H, W)
    out_sp = x * mask_sp
    return out_sp + out_ch


if __name__ == "__main__":
    B, C, H, W = 2, 4, 16, 16   # planes == inplanes == 4, inter_planes == 2
    key = jax.random.PRNGKey(0)
    kx, kp = jax.random.split(key)
    x = jax.random.normal(kx, (B, C, H, W), dtype=jnp.float32)
    params = init_params(kp, C, C)

    ref = _psa_reference(x, params)

    # f32 path (matches PyTorch semantics).
    out = jax.block_until_ready(psa_p_forward(x, params))
    assert out.shape == (B, C, H, W)
    err = float(jnp.max(jnp.abs(out - ref)))
    assert jnp.allclose(out, ref, atol=1e-4, rtol=1e-4), f"f32 max abs err {err}"

    # bf16-I/O path (halves HBM traffic for x; kernel math stays f32).
    out_bf16 = jax.block_until_ready(
        psa_p_forward(x, params, io_dtype=jnp.bfloat16))
    assert out_bf16.dtype == jnp.bfloat16
    assert jnp.allclose(out_bf16.astype(jnp.float32), ref, atol=5e-2, rtol=5e-2)

    print("KERNEL_OK")
</pallas_src>

<mosaic_0001>
module attributes {stable_mosaic.version = 11 : i64} {
  func.func @_psa_kernel(%arg0: i32, %arg1: memref<1x4x256xf32, #tpu.memory_space<vmem>>, %arg2: memref<4x1xf32, #tpu.memory_space<vmem>>, %arg3: memref<4x4xf32, #tpu.memory_space<vmem>>, %arg4: memref<4x4xf32, #tpu.memory_space<vmem>>, %arg5: memref<1x4x256xf32, #tpu.memory_space<vmem>>) attributes {dimension_semantics = [#tpu.dimension_semantics<parallel>], iteration_bounds = array<i64: 2>, scalar_prefetch = 0 : i64, scratch_operands = 0 : i64, tpu.core_type = #tpu.core_type<tc>, window_params = [{transform_indices = @transform_0, window_bounds = array<i64: 1, 4, 256>}, {pipeline_mode = #tpu.pipeline_mode<synchronous>, transform_indices = @transform_1, window_bounds = array<i64: 4, 1>}, {pipeline_mode = #tpu.pipeline_mode<synchronous>, transform_indices = @transform_2, window_bounds = array<i64: 4, 4>}, {pipeline_mode = #tpu.pipeline_mode<synchronous>, transform_indices = @transform_3, window_bounds = array<i64: 4, 4>}, {transform_indices = @transform_4, window_bounds = array<i64: 1, 4, 256>}]} {
    %c0 = arith.constant 0 : index
    %c0_0 = arith.constant 0 : index
    %c0_1 = arith.constant 0 : index
    %0 = vector.load %arg1[%c0, %c0_0, %c0_1] : memref<1x4x256xf32, #tpu.memory_space<vmem>>, vector<1x4x256xf32>
    %1 = vector.shape_cast %0 : vector<1x4x256xf32> to vector<4x256xf32>
    %c0_2 = arith.constant 0 : index
    %c0_3 = arith.constant 0 : index
    %2 = vector.load %arg2[%c0_2, %c0_3] : memref<4x1xf32, #tpu.memory_space<vmem>>, vector<4x1xf32>
    %3 = vector.broadcast %2 : vector<4x1xf32> to vector<4x256xf32>
    %4 = arith.mulf %1, %3 : vector<4x256xf32>
    %cst = arith.constant dense<0.000000e+00> : vector<256xf32>
    %5 = vector.multi_reduction <add>, %4, %cst [0] : vector<4x256xf32> to vector<256xf32>
    %6 = vector.shape_cast %5 : vector<256xf32> to vector<1x256xf32>
    %cst_4 = arith.constant dense<0xFF800000> : vector<1xf32>
    %7 = vector.multi_reduction <maximumf>, %6, %cst_4 [1] : vector<1x256xf32> to vector<1xf32>
    %8 = vector.shape_cast %7 : vector<1xf32> to vector<1x1xf32>
    %9 = vector.broadcast %8 : vector<1x1xf32> to vector<1x256xf32>
    %10 = arith.subf %6, %9 : vector<1x256xf32>
    %11 = math.exp %10 : vector<1x256xf32>
    %cst_5 = arith.constant dense<0.000000e+00> : vector<1xf32>
    %12 = vector.multi_reduction <add>, %11, %cst_5 [1] : vector<1x256xf32> to vector<1xf32>
    %13 = vector.shape_cast %12 : vector<1xf32> to vector<1x1xf32>
    %14 = tpu.reciprocal %13 : vector<1x1xf32> -> vector<1x1xf32>
    %15 = vector.broadcast %14 : vector<1x1xf32> to vector<1x256xf32>
    %16 = arith.mulf %11, %15 : vector<1x256xf32>
    %17 = vector.broadcast %16 : vector<1x256xf32> to vector<4x256xf32>
    %18 = arith.mulf %1, %17 : vector<4x256xf32>
    %cst_6 = arith.constant dense<0.000000e+00> : vector<4xf32>
    %19 = vector.multi_reduction <add>, %18, %cst_6 [1] : vector<4x256xf32> to vector<4xf32>
    %20 = vector.shape_cast %19 : vector<4xf32> to vector<4x1xf32>
    %c0_7 = arith.constant 0 : index
    %c0_8 = arith.constant 0 : index
    %21 = vector.load %arg3[%c0_7, %c0_8] : memref<4x4xf32, #tpu.memory_space<vmem>>, vector<4x4xf32>
    %cst_9 = arith.constant dense<0.000000e+00> : vector<4x1xf32>
    %22 = tpu.matmul %21, %20, %cst_9 {dimension_numbers = #tpu.dot_dimension_numbers<[1], [0], [0], [1], [0, 0, 1, 1], [], []>} : vector<4x4xf32>, vector<4x1xf32>, vector<4x1xf32> -> vector<4x1xf32>
    %23 = arith.negf %22 : vector<4x1xf32>
    %24 = math.exp %23 : vector<4x1xf32>
    %cst_10 = arith.constant 1.000000e+00 : f32
    %25 = vector.broadcast %cst_10 : f32 to vector<4x1xf32>
    %26 = arith.addf %25, %24 : vector<4x1xf32>
    %27 = arith.divf %25, %26 : vector<4x1xf32>
    %cst_11 = arith.constant dense<0.000000e+00> : vector<4xf32>
    %28 = vector.multi_reduction <add>, %1, %cst_11 [1] : vector<4x256xf32> to vector<4xf32>
    %29 = vector.shape_cast %28 : vector<4xf32> to vector<4x1xf32>
    %cst_12 = arith.constant 3.906250e-03 : f32
    %30 = vector.broadcast %cst_12 : f32 to vector<4x1xf32>
    %31 = arith.mulf %29, %30 : vector<4x1xf32>
    %c0_13 = arith.constant 0 : index
    %c0_14 = arith.constant 0 : index
    %32 = vector.load %arg4[%c0_13, %c0_14] : memref<4x4xf32, #tpu.memory_space<vmem>>, vector<4x4xf32>
    %cst_15 = arith.constant dense<0.000000e+00> : vector<4x1xf32>
    %33 = tpu.matmul %32, %31, %cst_15 {dimension_numbers = #tpu.dot_dimension_numbers<[1], [0], [0], [1], [0, 0, 1, 1], [], []>} : vector<4x4xf32>, vector<4x1xf32>, vector<4x1xf32> -> vector<4x1xf32>
    %34 = vector.broadcast %33 : vector<4x1xf32> to vector<4x256xf32>
    %35 = arith.mulf %1, %34 : vector<4x256xf32>
    %cst_16 = arith.constant dense<0.000000e+00> : vector<256xf32>
    %36 = vector.multi_reduction <add>, %35, %cst_16 [0] : vector<4x256xf32> to vector<256xf32>
    %37 = vector.shape_cast %36 : vector<256xf32> to vector<1x256xf32>
    %cst_17 = arith.constant dense<0xFF800000> : vector<1xf32>
    %38 = vector.multi_reduction <maximumf>, %37, %cst_17 [1] : vector<1x256xf32> to vector<1xf32>
    %39 = vector.shape_cast %38 : vector<1xf32> to vector<1x1xf32>
    %40 = vector.broadcast %39 : vector<1x1xf32> to vector<1x256xf32>
    %41 = arith.subf %37, %40 : vector<1x256xf32>
    %42 = math.exp %41 : vector<1x256xf32>
    %cst_18 = arith.constant dense<0.000000e+00> : vector<1xf32>
    %43 = vector.multi_reduction <add>, %42, %cst_18 [1] : vector<1x256xf32> to vector<1xf32>
    %44 = vector.shape_cast %43 : vector<1xf32> to vector<1x1xf32>
    %45 = tpu.reciprocal %44 : vector<1x1xf32> -> vector<1x1xf32>
    %46 = vector.broadcast %45 : vector<1x1xf32> to vector<1x256xf32>
    %47 = arith.mulf %42, %46 : vector<1x256xf32>
    %48 = arith.negf %47 : vector<1x256xf32>
    %49 = math.exp %48 : vector<1x256xf32>
    %cst_19 = arith.constant 1.000000e+00 : f32
    %50 = vector.broadcast %cst_19 : f32 to vector<1x256xf32>
    %51 = arith.addf %50, %49 : vector<1x256xf32>
    %52 = arith.divf %50, %51 : vector<1x256xf32>
    %53 = vector.broadcast %27 : vector<4x1xf32> to vector<4x256xf32>
    %54 = vector.broadcast %52 : vector<1x256xf32> to vector<4x256xf32>
    %55 = arith.addf %53, %54 : vector<4x256xf32>
    %56 = arith.mulf %1, %55 : vector<4x256xf32>
    %c0_20 = arith.constant 0 : index
    %c0_21 = arith.constant 0 : index
    %c0_22 = arith.constant 0 : index
    %57 = vector.load %arg5[%c0_20, %c0_21, %c0_22] : memref<1x4x256xf32, #tpu.memory_space<vmem>>, vector<1x4x256xf32>
    %58 = vector.shape_cast %57 : vector<1x4x256xf32> to vector<4x256xf32>
    %59 = vector.shape_cast %56 : vector<4x256xf32> to vector<1x4x256xf32>
    tpu.vector_store %arg5[%c0_20, %c0_21, %c0_22], %59 {strides = array<i32>} : memref<1x4x256xf32, #tpu.memory_space<vmem>>, vector<1x4x256xf32>,
    return
  }
  func.func @transform_0(%arg0: i32) -> (i32, i32, i32) {
    %c0_i32 = arith.constant 0 : i32
    %c0_i32_0 = arith.constant 0 : i32
    %c0_i32_1 = arith.constant 0 : i32
    return %arg0, %c0_i32, %c0_i32_0 : i32, i32, i32
  }
  func.func @transform_1(%arg0: i32) -> (i32, i32) {
    %c0_i32 = arith.constant 0 : i32
    %c0_i32_0 = arith.constant 0 : i32
    %c0_i32_1 = arith.constant 0 : i32
    return %c0_i32, %c0_i32_0 : i32, i32
  }
  func.func @transform_2(%arg0: i32) -> (i32, i32) {
    %c0_i32 = arith.constant 0 : i32
    %c0_i32_0 = arith.constant 0 : i32
    %c0_i32_1 = arith.constant 0 : i32
    return %c0_i32, %c0_i32_0 : i32, i32
  }
  func.func @transform_3(%arg0: i32) -> (i32, i32) {
    %c0_i32 = arith.constant 0 : i32
    %c0_i32_0 = arith.constant 0 : i32
    %c0_i32_1 = arith.constant 0 : i32
    return %c0_i32, %c0_i32_0 : i32, i32
  }
  func.func @transform_4(%arg0: i32) -> (i32, i32, i32) {
    %c0_i32 = arith.constant 0 : i32
    %c0_i32_0 = arith.constant 0 : i32
    %c0_i32_1 = arith.constant 0 : i32
    return %arg0, %c0_i32, %c0_i32_0 : i32, i32, i32
  }
}

</mosaic_0001>

<bundles_post_ra>
// kernel: tpu_custom_call.1
= control target key start
LH: loop header
LB: loop body
LE: loop exit
PB: predicated region body
PF: predicated region fallthrough
CT: control target
= control target key end

     0   :  { %9 = vsyncpa [#allocation3], 0  ;;  %s1047_s0 = inlined_call_operand.hbm [shape: f32[2,4,256], index: 0, kind: input, shape index: {}]   ;;  %s1048_s1 = inlined_call_operand.vmem [shape: f32[4,1], index: 1, kind: input, shape index: {}]   ;;  %s1049_s2 = inlined_call_operand.vmem [shape: f32[4,4], index: 2, kind: input, shape index: {}]   ;;  %s1050_s3 = inlined_call_operand.hbm [shape: f32[4,4], index: 3, kind: input, shape index: {}]   ;;  %s1051_s4 = inlined_call_operand.hbm [shape: f32[2,4,256], index: 4, kind: output, shape index: {}]  }
   0x1   :  { %11 = vsyncpa [#allocation3 + $0x1], 0 }
   0x2   :  { %12 = vsyncpa [#allocation6], 0 }
   0x3   :  { %13 = vsyncpa [#allocation4], 0 }
   0x4   :  { %15 = vsyncpa [#allocation4 + $0x1], 0  ;;  %s873_s15 = smov 0   ;;  %s875_s16 = smov 0  }
   0x5   :  { %s877_s17 = smov 0   ;;  %s879_s18 = smov 0  }
   0x6 LB: > { %s894_s19 = sadd.s32 4294967295, %s843_s18   ;;  %s602_s20 = sadd.s32 4294967294, %s843_s18   ;;  %s843_s18 = sphi %s879_s18, %s1061_s18   ;;  %s839_s17 = sphi %s877_s17, %s1060_s17   ;;  %s835_s16 = sphi %s875_s16, %s1059_s16   ;;  %s831_s15 = sphi %s873_s15, %s1058_s15  }
   0x7   : > { %p41_p0 = scmp.ne.s32.totalorder %s835_s16, %s831_s15  ;;  %p42_p1 = scmp.eq.s32.totalorder %s894_s19, 0 }
   0x8   : > { %p128_p2 = scmp.eq.s32.totalorder %s894_s19, 1  ;;  %p134_p3 = scmp.eq.s32.totalorder %s602_s20, 1 }
   0x9   : > { %p903_p4 = por %p42_p1, %p41_p0  ;;  %p603_p5 = scmp.ge.s32.totalorder %s843_s18, 1 }
   0xa   : > { %p908_p6 = por %p134_p3, %p41_p0  ;;  %p141_p7 = scmp.lt.s32.totalorder %s843_s18, 3 }
   0xb   : > { %s159_s25 = sshll.u32 %s1050_s3, 4  ;;  %s845_s27 = smov [#allocation5]   ;;  %s160_s25 = int_to_ptr.hbm [resolvable:$true] %s159_s25 }
   0xc   : > { %p916_p8 = pnand %p603_p5, %p141_p7  ;;  %s161_s28 = sshll.u32 %s845_s27, 4  ;;  %s162_s28 = int_to_ptr.vmem [resolvable:$true] %s161_s28 }
   0xd   : > { %s926_s29 = sadd.s32 1, %s843_s18   ;;  %s28_s30 = sadd.s32 1, %s839_s17 }
   0xe   : > { %p635_p10 = pneg %p916_p8  ;;  %s25_s5 = ssub.s32 %s843_s18, %s926_s29 }
   0xf   : > { %p26_p12 = scmp.eq.s32.totalorder %s25_s5, 0  ;;  %p35_p13 = scmp.ne.s32.totalorder %s839_s17, %s835_s16 }
  0x10   : > { %p636_p11 = pnand %p635_p10, %p42_p1  ;;  %p36_p0 = scmp.eq.s32.totalorder %s843_s18, 0 }
  0x11   : > { %s935_s6 = scalar_select %p26_p12, %s839_s17, %s28_s30  }
  0x12   : > { %638 = dma.hbm_to_vmem [thread:$0]  (!%p636_p11), %s160_s25, 64, %s162_s28, [#allocation6]  }
  0x13   : > { %p939_p3 = por %p128_p2, %p35_p13  ;;  %p648_p5 = scmp.lt.s32.totalorder %s843_s18, 2 }
  0x14   : > { %s172_s8 = sand.u32 1, %s839_s17   ;;  %s625_s9 = sshll.u32 %s843_s18, 3 }
  0x15   : > { %p37_p7 = por %p36_p0, %p35_p13  ;;  %s606_s10 = sshll.u32 %s172_s8, 3 }
  0x16   : > { %s181_s13 = scalar_lea.hbm %s1047_s0, %s625_s9  ;;  %s176_s20 = scalar_lea.vmem [#allocation2], %s606_s10 }
  0x17   : > { %s183_s14 = sshll.u32 %s181_s13, 4  ;;  %s185_s23 = sshll.u32 %s176_s20, 4  ;;  %s184_s14 = int_to_ptr.hbm [resolvable:$true] %s183_s14  ;;  %s186_s23 = int_to_ptr.vmem [resolvable:$true] %s185_s23 }
  0x18   : > { %p949_p10 = pnand %p648_p5, %p37_p7  ;;  %s173_s25 = scalar_lea.sflag [#allocation3], %s172_s8 }
  0x19   : > { %s743_s27 = sshra.s32 %s184_s14, 4  ;;  %s750_s9 = scalar_lea.hbm %s1047_s0, 16  ;;  %s744_s27 = int_to_ptr.hbm [resolvable:$true] %s743_s27 }
  0x1a   : > { %s745_s28 = scalar_lea.hbm %s744_s27, 8  ;;  %p747_p11 = pneg %p949_p10 }
  0x1b   : > { %p746_p2 = scmp.ne.s32.totalorder %s744_s27, %s745_s28  ;;  %p751_p0 = scmp.lt.s32.totalorder %s744_s27, %s1047_s0 }
  0x1c   : > { %p752_p5 = scmp.lt.s32.totalorder %s750_s9, %s745_s28 }
  0x1d   : > { %p748_p12 = pnand %p747_p11, %p746_p2 }
  0x1e   : > { %p753_p7 = por %p752_p5, %p751_p0 }
  0x1f   : > { %p749_p13 = pneg %p748_p12 }
  0x21   : > { %p754_p9 = pnand %p753_p7, %p749_p13 }
  0x23   : > { %757 = shalt.err (!%p754_p9)
}
  0x24   : > { %642 = dma.hbm_to_vmem [thread:$0]  (!%p949_p10), %s184_s14, 128, %s186_s23, %s173_s25  }
  0x25   : > { %194 = sbr.rel (%p916_p8) target bundleno = 1145 (0x479), region = 36  ;;  %s966_s8 = sand.u32 (!%p916_p8), 1, %s835_s16  }
  0x26   : > { %s610_s12 = sshll.u32 (!%p916_p8), %s966_s8, 3  ;;  %s197_s13 = scalar_lea.sflag (!%p916_p8), [#allocation3], %s966_s8 }
  0x27   : > { %s200_s20 = scalar_lea.vmem (!%p916_p8), [#allocation2], %s610_s12 }
  0x2a   : > { %818 = dma.done.wait (%p903_p4), %s197_s13, 128  }
  0x2b   : > { %820 = vsyncadd (%p903_p4), %s197_s13, 4294967168 }
  0x2c   : > { %822 = dma.done.wait (%p42_p1), [#allocation6], 64  }
  0x2d   : > { %824 = vsyncadd (%p42_p1), [#allocation6], 4294967232  ;;  %v846_v0 = vmov 0   ;;  %v232_v1 = vld [vmem:[%s1048_s1] sm:$0xf]  ;;  %v986_v6 = vld [vmem:[%s200_s20] sm:$0xff] }
  0x2e   : > { %686 = vset.pattern.permute.xlu0 %v846_v0  ;;  %687 = vset.pattern.permute.xlu2 %v846_v0  ;;  %v847_v2 = vmov 839922192   ;;  %vm249_vm0 = vcmask 1043456   ;;  %vm310_vm5 = vcmask 31744   ;;  %v368_v63 = vld [vmem:[#allocation5] sm:$0xf] }
  0x2f   : > { %688 = vset.pattern.permute.xlu1 %v846_v0  ;;  %235 = vperm.xlu0 %686, %v232_v1   ;;  %v983_v3 = vunpack.c.l.s4 %v847_v2  ;;  %v309_v1 = vld [vmem:[%s1049_s2] sm:$0xf]  ;;  %s626_s24 = sshll.u32 %s894_s19, 3  ;;  %s230_s19 = scalar_lea.vmem [#allocation7], %s610_s12 }
  0x30   : > { %s517_s28 = scalar_lea.hbm %s1051_s4, %s626_s24  ;;  %s519_s30 = sshll.u32 %s230_s19, 4  ;;  %s520_s30 = int_to_ptr.vmem [resolvable:$true] %s519_s30 }
  0x31   : > { %v239_v4 = vunpack.c.0.s8 %v983_v3  ;;  %s521_s5 = sshll.u32 %s517_s28, 4  ;;  %s506_s9 = scalar_lea.sflag [#allocation4], %s966_s8  ;;  %s522_s5 = int_to_ptr.hbm [resolvable:$true] %s521_s5 }
  0x32   : > { %s787_s10 = sshra.s32 %s522_s5, 4  ;;  %s793_s12 = scalar_lea.hbm %s1051_s4, 16  ;;  %s788_s10 = int_to_ptr.hbm [resolvable:$true] %s787_s10 }
  0x33   : > { %s789_s11 = scalar_lea.hbm %s788_s10, 8  ;;  %p794_p9 = scmp.lt.s32.totalorder %s788_s10, %s1051_s4 }
  0x34   : > { %p790_p1 = scmp.ne.s32.totalorder %s788_s10, %s789_s11  ;;  %p795_p10 = scmp.lt.s32.totalorder %s793_s12, %s789_s11 }
  0x36   : > { %p791_p4 = pnand %p790_p1, %p939_p3  ;;  %p796_p2 = por %p795_p10, %p794_p9 }
  0x38   : > { %p792_p8 = pneg %p791_p4 }
  0x3a   : > { %p797_p11 = pnand %p796_p2, %p792_p8 }
  0xa1   : > { %v236_v5 = vpop.permute.xlu0 %235 }
  0xa2   : > { %v240_v7 = vperm.slane %v236_v5, %v239_v4 }
  0xa4   : > { %v242_v8 = vmul.f32 %v240_v7, %v986_v6 }
  0xa6   : > { %244 = vst [vmem:[#allocation1] ss:$2 sm:$0xff] %v242_v8 }
  0xad   : > { %v245_v9 = vld.sshfl [vmem:[#allocation1] sm:$0xff pattern:$0x75316420]  ;;  %v246_v10 = vld.sshfl [vmem:[#allocation1 + $0x8] sm:$0xff pattern:$0x75316420] }
  0xae   : > { %v250_v11 = vsel %vm249_vm0, %v245_v9, 0.0  ;;  %v257_v12 = vsel %vm249_vm0, %v246_v10, 0.0 }
  0xaf   : > { %v251_v13 = vrot.slane %v250_v11, 4  ;;  %v258_v14 = vrot.slane %v257_v12, 4 }
  0xb1   : > { %v252_v15 = vadd.f32 %v251_v13, %v250_v11  ;;  %v259_v16 = vadd.f32 %v258_v14, %v257_v12 }
  0xb3   : > { %v253_v17 = vrot.slane %v252_v15, 2  ;;  %v260_v18 = vrot.slane %v259_v16, 2 }
  0xb5   : > { %v254_v19 = vadd.f32 %v253_v17, %v252_v15  ;;  %v261_v20 = vadd.f32 %v260_v18, %v259_v16 }
  0xb7   : > { %v255_v21 = vrot.slane %v254_v19, 1  ;;  %v262_v22 = vrot.slane %v261_v20, 1 }
  0xb9   : > { %v256_v23 = vadd.f32 %v255_v21, %v254_v19  ;;  %v263_v24 = vadd.f32 %v262_v22, %v261_v20 }
  0xbb   : > { %v264_v25 = vmax.f32 %v256_v23, %v263_v24 }
  0xbd   : > { %265 = vmax.xlane.f32.xlu0 %v264_v25 }
 0x130   : > { %v266_v26 = vpop.xlane.xlu0 %265 }
 0x131   : > { %v267_v27 = vsub.f32 %v256_v23, %v266_v26  ;;  %v268_v28 = vsub.f32 %v263_v24, %v266_v26 }
 0x133   : > { %v269_v29 = vmul.f32 1.442695, %v267_v27  ;;  %v271_v30 = vmul.f32 1.442695, %v268_v28 }
 0x135   : > { %689 = vpow2.f32 %v269_v29 }
 0x136   : > { %691 = vpow2.f32 %v271_v30 }
 0x13b   : > { %v690_v31 = vpop.eup %689 }
 0x13c   : > { %v692_v32 = vpop.eup %691 }
 0x13d   : > { %v273_v33 = vadd.f32 %v692_v32, %v690_v31 }
 0x13f   : > { %274 = vadd.xlane.f32.xlu1 %v273_v33 }
 0x1b2   : > { %v275_v34 = vpop.xlane.xlu1 %274 }
 0x1b3   : > { %693 = vrcp.f32 %v275_v34  ;;  %v287_v38 = vand.u32 2147483648, %v275_v34  ;;  %v285_v40 = vand.u32 2147483647, %v275_v34  ;;  %vm281_vm2 = vweird.f32 %v275_v34 }
 0x1b5   : > { %v288_v42 = vor.u32 1.1754944e-38, %v287_v38  ;;  %vm286_vm4 = vcmp.eq.f32.partialorder %v285_v40, 8.507059e+37 }
 0x1b9   : > { %v694_v35 = vpop.eup %693 }
 0x1ba   : > { %v277_v36 = vmul.f32 %v694_v35, %v275_v34  ;;  %vm282_vm1 = vweird.f32 %v694_v35 }
 0x1bb   : > { %vm283_vm3 = vmor %vm281_vm2, %vm282_vm1 }
 0x1bc   : > { %v278_v37 = vsub.f32 1.0, %v277_v36 }
 0x1be   : > { %v279_v39 = vmul.f32 %v694_v35, %v278_v37 }
 0x1c0   : > { %v280_v41 = vadd.f32 %v694_v35, %v279_v39 }
 0x1c2   : > { %v284_v43 = vsel %vm283_vm3, %v694_v35, %v280_v41 }
 0x1c3   : > { %v289_v44 = vsel %vm286_vm4, %v288_v42, %v284_v43 }
 0x1c4   : > { %v291_v45 = vmul.f32 %v692_v32, %v289_v44  ;;  %v290_v46 = vmul.f32 %v690_v31, %v289_v44 }
 0x1c6   : > { %v294_v47 = vrot.slane %v291_v45, 4 }
 0x1c8   : > { %v295_v48 = vsel %vm249_vm0, %v290_v46, %v294_v47 }
 0x1c9   : > { %v297_v49 = vmul.f32 %v295_v48, %v986_v6 }
 0x1cb   : > { %299 = vst [vmem:[#allocation1] ss:$2 sm:$0xff] %v297_v49 }
 0x1d2   : > { %v300_v50 = vld.sshfl [vmem:[#allocation1] sm:$0xff pattern:$0x75316420]  ;;  %v301_v51 = vld.sshfl [vmem:[#allocation1 + $0x8] sm:$0xff pattern:$0x75316420] }
 0x1d3   : > { %v304_v52 = vsel %vm249_vm0, %v300_v50, 0.0  ;;  %v305_v53 = vsel %vm249_vm0, %v301_v51, 0.0  ;;  %357 = vst [vmem:[#allocation1] ss:$2 sm:$0xff] %v986_v6 }
 0x1d4   : > { %v306_v54 = vadd.f32 %v305_v53, %v304_v52 }
 0x1d6   : > { %307 = vadd.xlane.f32.xlu2 %v306_v54 }
 0x1da   : > { %v358_v55 = vld.sshfl [vmem:[#allocation1] sm:$0xff pattern:$0x75316420]  ;;  %v359_v56 = vld.sshfl [vmem:[#allocation1 + $0x8] sm:$0xff pattern:$0x75316420] }
 0x1db   : > { %v362_v57 = vsel %vm249_vm0, %v358_v55, 0.0  ;;  %v363_v58 = vsel %vm249_vm0, %v359_v56, 0.0 }
 0x1dc   : > { %v364_v59 = vadd.f32 %v363_v58, %v362_v57 }
 0x1de   : > { %365 = vadd.xlane.f32.xlu1 %v364_v59 }
 0x249   : > { %v308_v60 = vpop.xlane.xlu2 %307 }
 0x24a   : > { %613 = vmatpush.msk.msra.mxu0 %vm249_vm0, %v308_v60 }
 0x24b   : > { %614 = vmatmul.msk.f32.vlgmr.msra.gmra.mxu0 %vm310_vm5, %v309_v1 }
 0x251   : > { %v366_v61 = vpop.xlane.xlu1 %365 }
 0x252   : > { %v367_v62 = vmul.f32 0.00390625, %v366_v61 }
 0x254   : > { %616 = vmatpush.msk.msra.mxu1 %vm249_vm0, %v367_v62 }
 0x255   : > { %617 = vmatmul.msk.f32.vlgmr.msra.gmra.mxu1 %vm310_vm5, %v368_v63 }
 0x2c8   : > { %v334_v23 = vpop.f32.mrf.mxu0 }
 0x2c9   : > { %v615_v24 = vmul.f32 -1.442695, %v334_v23 }
 0x2cb   : > { %695 = vpow2.f32 %v615_v24 }
 0x2d1   : > { %v696_v28 = vpop.eup %695 }
 0x2d2   : > { %v392_v0 = vpop.f32.mrf.mxu1  ;;  %v340_v31 = vadd.f32 1.0, %v696_v28 }
 0x2d3   : > { %397 = vperm.xlu2 %687, %v392_v0  }
 0x2d4   : > { %vm346_vm6 = vweird.f32 %v340_v31  ;;  %v352_v39 = vand.u32 2147483648, %v340_v31  ;;  %v350_v41 = vand.u32 2147483647, %v340_v31 }
 0x2d6   : > { %v353_v42 = vor.u32 1.1754944e-38, %v352_v39  ;;  %vm351_vm9 = vcmp.eq.f32.partialorder %v350_v41, 8.507059e+37 }
 0x32d   : > { %v398_v2 = vpop.permute.xlu2 %397 }
 0x32e   : > { %v402_v5 = vperm.slane %v398_v2, %v239_v4 }
 0x330   : > { %v404_v7 = vmul.f32 %v402_v5, %v986_v6 }
 0x332   : > { %406 = vst [vmem:[#allocation1] ss:$2 sm:$0xff] %v404_v7 }
 0x339   : > { %v407_v8 = vld.sshfl [vmem:[#allocation1] sm:$0xff pattern:$0x75316420]  ;;  %v408_v9 = vld.sshfl [vmem:[#allocation1 + $0x8] sm:$0xff pattern:$0x75316420] }
 0x33a   : > { %v411_v10 = vsel %vm249_vm0, %v407_v8, 0.0  ;;  %v418_v11 = vsel %vm249_vm0, %v408_v9, 0.0 }
 0x33b   : > { %v412_v12 = vrot.slane %v411_v10, 4  ;;  %v419_v13 = vrot.slane %v418_v11, 4 }
 0x33d   : > { %v413_v14 = vadd.f32 %v412_v12, %v411_v10  ;;  %v420_v15 = vadd.f32 %v419_v13, %v418_v11 }
 0x33f   : > { %v414_v16 = vrot.slane %v413_v14, 2  ;;  %v421_v17 = vrot.slane %v420_v15, 2 }
 0x341   : > { %v415_v18 = vadd.f32 %v414_v16, %v413_v14  ;;  %v422_v19 = vadd.f32 %v421_v17, %v420_v15 }
 0x343   : > { %v416_v20 = vrot.slane %v415_v18, 1  ;;  %v423_v3 = vrot.slane %v422_v19, 1 }
 0x345   : > { %v417_v4 = vadd.f32 %v416_v20, %v415_v18  ;;  %v424_v21 = vadd.f32 %v423_v3, %v422_v19 }
 0x347   : > { %v425_v22 = vmax.f32 %v417_v4, %v424_v21 }
 0x349   : > { %426 = vmax.xlane.f32.xlu1 %v425_v22 }
 0x3bc   : > { %v427_v25 = vpop.xlane.xlu1 %426 }
 0x3bd   : > { %v428_v26 = vsub.f32 %v417_v4, %v427_v25  ;;  %v429_v27 = vsub.f32 %v424_v21, %v427_v25 }
 0x3bf   : > { %v430_v29 = vmul.f32 1.442695, %v428_v26  ;;  %v432_v30 = vmul.f32 1.442695, %v429_v27 }
 0x3c1   : > { %697 = vpow2.f32 %v430_v29 }
 0x3c2   : > { %699 = vpow2.f32 %v432_v30 }
 0x3c3   : > { %701 = vrcp.f32 %v340_v31 }
 0x3c7   : > { %v698_v32 = vpop.eup %697 }
 0x3c8   : > { %v700_v33 = vpop.eup %699 }
 0x3c9   : > { %v434_v34 = vadd.f32 %v700_v33, %v698_v32  ;;  %v702_v35 = vpop.eup %701 }
 0x3ca   : > { %v342_v36 = vmul.f32 %v702_v35, %v340_v31  ;;  %vm347_vm7 = vweird.f32 %v702_v35 }
 0x3cb   : > { %435 = vadd.xlane.f32.xlu1 %v434_v34  ;;  %vm348_vm8 = vmor %vm346_vm6, %vm347_vm7 }
 0x3cc   : > { %v343_v37 = vsub.f32 1.0, %v342_v36 }
 0x3ce   : > { %v344_v38 = vmul.f32 %v702_v35, %v343_v37 }
 0x3d0   : > { %v345_v40 = vadd.f32 %v702_v35, %v344_v38 }
 0x3d2   : > { %v349_v43 = vsel %vm348_vm8, %v702_v35, %v345_v40 }
 0x3d3   : > { %v354_v44 = vsel %vm351_vm9, %v353_v42, %v349_v43 }
 0x3e4   : > { %493 = vperm.xlu1 %688, %v354_v44  }
 0x43e   : > { %v436_v45 = vpop.xlane.xlu1 %435 }
 0x43f   : > { %703 = vrcp.f32 %v436_v45  ;;  %v448_v49 = vand.u32 2147483648, %v436_v45  ;;  %v446_v51 = vand.u32 2147483647, %v436_v45  ;;  %vm442_vm11 = vweird.f32 %v436_v45 }
 0x441   : > { %v449_v53 = vor.u32 1.1754944e-38, %v448_v49  ;;  %vm447_vm13 = vcmp.eq.f32.partialorder %v446_v51, 8.507059e+37 }
 0x445   : > { %v704_v46 = vpop.eup %703 }
 0x446   : > { %v438_v47 = vmul.f32 %v704_v46, %v436_v45  ;;  %vm443_vm10 = vweird.f32 %v704_v46 }
 0x447   : > { %vm444_vm12 = vmor %vm442_vm11, %vm443_vm10 }
 0x448   : > { %v439_v48 = vsub.f32 1.0, %v438_v47 }
 0x44a   : > { %v440_v50 = vmul.f32 %v704_v46, %v439_v48 }
 0x44c   : > { %v441_v52 = vadd.f32 %v704_v46, %v440_v50 }
 0x44e   : > { %v445_v54 = vsel %vm444_vm12, %v704_v46, %v441_v52 }
 0x44f   : > { %v450_v55 = vsel %vm447_vm13, %v449_v53, %v445_v54 }
 0x450   : > { %v451_v56 = vmul.f32 %v698_v32, %v450_v55  ;;  %v452_v57 = vmul.f32 %v700_v33, %v450_v55 }
 0x452   : > { %v618_v58 = vmul.f32 -1.442695, %v451_v56  ;;  %v619_v59 = vmul.f32 -1.442695, %v452_v57 }
 0x454   : > { %705 = vpow2.f32 %v618_v58 }
 0x455   : > { %707 = vpow2.f32 %v619_v59 }
 0x456   : > { %v494_v21 = vpop.permute.xlu1 %493 }
 0x45a   : > { %v706_v60 = vpop.eup %705 }
 0x45b   : > { %v708_v61 = vpop.eup %707  ;;  %v459_v62 = vadd.f32 1.0, %v706_v60 }
 0x45c   : > { %v460_v63 = vadd.f32 1.0, %v708_v61 }
 0x45d   : > { %709 = vrcp.f32 %v459_v62  ;;  %v472_v10 = vand.u32 2147483648, %v459_v62  ;;  %v470_v12 = vand.u32 2147483647, %v459_v62  ;;  %vm466_vm1 = vweird.f32 %v459_v62 }
 0x45e   : > { %711 = vrcp.f32 %v460_v63  ;;  %v487_v11 = vand.u32 2147483648, %v460_v63  ;;  %v485_v14 = vand.u32 2147483647, %v460_v63  ;;  %vm481_vm3 = vweird.f32 %v460_v63 }
 0x45f   : > { %v473_v18 = vor.u32 1.1754944e-38, %v472_v10  ;;  %vm471_vm5 = vcmp.eq.f32.partialorder %v470_v12, 8.507059e+37 }
 0x460   : > { %v488_v19 = vor.u32 1.1754944e-38, %v487_v11  ;;  %vm486_vm6 = vcmp.eq.f32.partialorder %v485_v14, 8.507059e+37 }
 0x463   : > { %v710_v0 = vpop.eup %709 }
 0x464   : > { %v712_v1 = vpop.eup %711  ;;  %v462_v2 = vmul.f32 %v710_v0, %v459_v62  ;;  %vm467_vm14 = vweird.f32 %v710_v0 }
 0x465   : > { %v477_v5 = vmul.f32 %v712_v1, %v460_v63  ;;  %vm482_vm15 = vweird.f32 %v712_v1  ;;  %vm468_vm2 = vmor %vm466_vm1, %vm467_vm14 }
 0x466   : > { %v463_v7 = vsub.f32 1.0, %v462_v2  ;;  %vm483_vm4 = vmor %vm481_vm3, %vm482_vm15 }
 0x467   : > { %v478_v8 = vsub.f32 1.0, %v477_v5 }
 0x468   : > { %v464_v9 = vmul.f32 %v710_v0, %v463_v7 }
 0x469   : > { %v479_v13 = vmul.f32 %v712_v1, %v478_v8 }
 0x46a   : > { %v465_v15 = vadd.f32 %v710_v0, %v464_v9 }
 0x46b   : > { %v480_v16 = vadd.f32 %v712_v1, %v479_v13 }
 0x46c   : > { %v469_v17 = vsel %vm468_vm2, %v710_v0, %v465_v15 }
 0x46d   : > { %v484_v20 = vsel %vm483_vm4, %v712_v1, %v480_v16  ;;  %v474_v3 = vsel %vm471_vm5, %v473_v18, %v469_v17 }
 0x46e   : > { %v489_v4 = vsel %vm486_vm6, %v488_v19, %v484_v20  ;;  %v496_v23 = vadd.f32 %v494_v21, %v474_v3 }
 0x46f   : > { %v497_v22 = vadd.f32 %v494_v21, %v489_v4 }
 0x471   : > { %v500_v24 = vrot.slane %v497_v22, 4 }
 0x473   : > { %v501_v25 = vsel %vm249_vm0, %v496_v23, %v500_v24 }
 0x474   : > { %v503_v26 = vmul.f32 %v501_v25, %v986_v6 }
 0x476   : > { %504 = vst [vmem:[%s230_s19] sm:$0xff] %v503_v26 }
 0x477   : > { %800 = shalt.err (!%p797_p11)
}
 0x478   : > { %633 = dma.vmem_to_hbm [thread:$0]  (%p939_p3), %s520_s30, 128, %s522_s5, %s506_s9  }
 0x479 PF: > { %s533_s8 = sand.u32 1, %s831_s15   ;;  %p1057_p12 = scmp.ge.s32.totalorder %s843_s18, 2 }
 0x47a   : > { %s534_s21 = scalar_lea.sflag [#allocation4], %s533_s8 }
 0x47b   : > { %p644_p13 = pnand %p1057_p12, %p908_p6 }
 0x47d   : > { %p645_p0 = pneg %p644_p13 }
 0x47f   : > { %826 = dma.done.wait (%p645_p0), %s534_s21, 128  }
 0x480   : > { %828 = vsyncadd (%p645_p0), %s534_s21, 4294967168  ;;  %p18_p5 = scmp.ge.s32.totalorder %s926_s29, 4   ;;  %s1058_s15 = smov %s835_s16 }
 0x481   : > { %s1059_s16 = smov %s839_s17  ;;  %s1060_s17 = smov %s935_s6 }
 0x482   : > { %s1061_s18 = smov %s926_s29  ;;  %20 = sbr.rel (!%p18_p5) target bundleno = 6 (0x6), region = 85 }
 0x487   :  { %540 = vsyncpa [#allocation3], 1 }
 0x488   :  { %542 = vsyncpa [#allocation3 + $0x1], 1 }
 0x489   :  { %543 = vsyncpa [#allocation6], 1 }
 0x48a   :  { %544 = vsyncpa [#allocation4], 1 }
 0x48b   :  { %546 = vsyncpa [#allocation4 + $0x1], 1 }

</bundles_post_ra>
